<compile_context>
chip_gen: v6e
topology: v6e:2x2x1
jax: 0.10.0
libtpu: 0.0.40
codegen_flags: <defaults>
</compile_context>

<pallas_src>
import numpy as np
import jax
import jax.numpy as jnp
from jax.experimental import pallas as pl
from jax.experimental.pallas import tpu as pltpu

S_TARGET = 2048          # rows (of 128 points) per grid step -> 3 MiB / buffer
_POINT_ALIGN = 8 * 128   # pad N to a multiple of one (8,128) f32 tile


def _round_up(x, m):
    return ((x + m - 1) // m) * m


# ---------------------------------------------------------------------------
# SO(3) exponential map (Rodrigues) -- tiny 3x3 glue, stays in plain JAX.
# ---------------------------------------------------------------------------
def so3_exp(r):
    theta2 = jnp.sum(r * r)
    theta = jnp.sqrt(theta2)
    K = jnp.array([[0.0, -r[2], r[1]],
                   [r[2], 0.0, -r[0]],
                   [-r[1], r[0], 0.0]], dtype=jnp.float32)
    eps = 1e-8
    safe = theta > eps
    A = jnp.where(safe, jnp.sin(theta) / jnp.where(safe, theta, 1.0), 1.0)
    B = jnp.where(safe, (1.0 - jnp.cos(theta)) / jnp.where(safe, theta2, 1.0), 0.5)
    return jnp.eye(3, dtype=jnp.float32) + A * K + B * (K @ K)


# ---------------------------------------------------------------------------
# Pallas kernel: affine transform of a (3, S, 128) slab of lane-dense points.
#   out[c] = M[c,0]*x + M[c,1]*y + M[c,2]*z + M[c,3]
# m_ref is a (12,) f32 SMEM ref (scalar prefetch) holding M[:3, :4] row-major.
# ---------------------------------------------------------------------------
def _apply_transform_kernel(m_ref, pts_ref, out_ref):
    x = pts_ref[0]          # (S, 128) dense plane, full vreg occupancy
    y = pts_ref[1]
    z = pts_ref[2]
    for c in range(3):      # unrolled at trace time
        out_ref[c, :, :] = (m_ref[4 * c + 0] * x
                            + m_ref[4 * c + 1] * y
                            + m_ref[4 * c + 2] * z
                            + m_ref[4 * c + 3])


def _apply_transform_pallas(pts3, m_flat, s):
    _, rows, _ = pts3.shape
    grid = pl.cdiv(rows, s)          # trailing partial block handled by Pallas
    return pl.pallas_call(
        _apply_transform_kernel,
        out_shape=jax.ShapeDtypeStruct(pts3.shape, jnp.float32),
        grid_spec=pltpu.PrefetchScalarGridSpec(
            num_scalar_prefetch=1,                    # m_flat -> SMEM
            grid=(grid,),
            in_specs=[pl.BlockSpec((3, s, 128), lambda i, m: (0, i, 0))],
            out_specs=pl.BlockSpec((3, s, 128), lambda i, m: (0, i, 0)),
        ),
        compiler_params=pltpu.CompilerParams(
            dimension_semantics=("parallel",),
            vmem_limit_bytes=32 * 1024 * 1024),       # 2 arrays x 2 bufs x 3 MiB fits
    )(m_flat, pts3)


def _choose_block_rows(rows):
    # Multiple of 8 (sublanes), capped at S_TARGET, aiming for >= 4 grid steps
    # so the "parallel" axis can feed both TensorCores on v7x.
    s = _round_up(max(1, -(-rows // 4)), 8)
    return max(8, min(S_TARGET, s, _round_up(rows, 8)))


# ---------------------------------------------------------------------------
# Forward pass equivalent to Transform.forward
# ---------------------------------------------------------------------------
def transform_forward(xyzs_a, init_transform, R, T):
    # transform = eye(4); transform[:3,:3] = Exp(R); transform[:3,3] = T
    rot = so3_exp(R)
    transform = jnp.eye(4, dtype=jnp.float32)
    transform = transform.at[:3, :3].set(rot)
    transform = transform.at[:3, 3].set(T)

    # Fold the two 4x4 transforms into one; only the top 3x4 block matters.
    M = transform @ init_transform.astype(jnp.float32)
    m_flat = M[:3, :].reshape(-1)                      # (12,) scalars -> SMEM

    orig_shape = xyzs_a.shape
    pts = xyzs_a.reshape(-1, 3).astype(jnp.float32)
    n = pts.shape[0]

    # AoS (N,3) -> SoA (3,N) relayout.  In a real pipeline the point cloud
    # should stay in SoA layout across surrounding ops (or this op should be
    # fused into its producer/consumer) so this transpose pass disappears; the
    # kernel is pure HBM-bound and consumes/produces SoA planes natively.
    pts_t = pts.T                                      # (3, n)
    n_pad = _round_up(n, _POINT_ALIGN)
    if n_pad != n:                                     # <= 1023-point pad only
        pts_t = jnp.pad(pts_t, ((0, 0), (0, n_pad - n)))
    rows = n_pad // 128
    pts3 = pts_t.reshape(3, rows, 128)                 # free (metadata) reshape

    s = _choose_block_rows(rows)
    out3 = _apply_transform_pallas(pts3, m_flat, s)    # (3, rows, 128)

    out_t = out3.reshape(3, n_pad)[:, :n]
    return out_t.T.reshape(orig_shape)


if __name__ == "__main__":
    key = jax.random.PRNGKey(0)

    # Deterministic init_transform: rotation about z by 0.3 rad + translation.
    c0, s0 = np.cos(0.3), np.sin(0.3)
    init_transform = jnp.array(
        [[c0, -s0, 0.0, 0.1],
         [s0, c0, 0.0, -0.2],
         [0.0, 0.0, 1.0, 0.3],
         [0.0, 0.0, 0.0, 1.0]], dtype=jnp.float32)

    # Learnable params, initialized exactly as in the module (zeros).
    R = jnp.zeros((3,), dtype=jnp.float32)
    T = jnp.zeros((3,), dtype=jnp.float32)

    # Small point cloud: batch=2, 16 points, 3 coords -> N = 32 points.
    xyzs_a = jax.random.normal(key, (2, 16, 3), dtype=jnp.float32)

    fwd = jax.jit(transform_forward)
    out = jax.block_until_ready(fwd(xyzs_a, init_transform, R, T))

    # Pure-JAX reference (mirrors the PyTorch math exactly).
    rot = so3_exp(R)
    tr = jnp.eye(4, dtype=jnp.float32).at[:3, :3].set(rot).at[:3, 3].set(T)
    b = xyzs_a.reshape(-1, 3)
    b1 = jnp.concatenate([b, jnp.ones((b.shape[0], 1), jnp.float32)], axis=1)
    b2 = (init_transform @ b1.T).T
    b3 = (tr @ b2.T).T
    ref = b3[:, :3].reshape(xyzs_a.shape)

    np.testing.assert_allclose(np.asarray(out), np.asarray(ref),
                               rtol=1e-5, atol=1e-5)
    print("KERNEL_OK")
</pallas_src>

<mosaic_0001>
module attributes {stable_mosaic.version = 11 : i64} {
  func.func @_apply_transform_kernel(%arg0: i32, %arg1: memref<12xf32, #tpu.memory_space<smem>>, %arg2: memref<3x8x128xf32, #tpu.memory_space<vmem>>, %arg3: memref<3x8x128xf32, #tpu.memory_space<vmem>>) attributes {dimension_semantics = [#tpu.dimension_semantics<parallel>], iteration_bounds = array<i64: 1>, scalar_prefetch = 1 : i64, scratch_operands = 0 : i64, tpu.core_type = #tpu.core_type<tc>, window_params = [{transform_indices = @transform_0, window_bounds = array<i64: 3, 8, 128>}, {transform_indices = @transform_1, window_bounds = array<i64: 3, 8, 128>}]} {
    %c0 = arith.constant 0 : index
    %c0_0 = arith.constant 0 : index
    %c0_1 = arith.constant 0 : index
    %0 = vector.load %arg2[%c0, %c0_0, %c0_1] : memref<3x8x128xf32, #tpu.memory_space<vmem>>, vector<1x8x128xf32>
    %1 = vector.shape_cast %0 : vector<1x8x128xf32> to vector<8x128xf32>
    %c1 = arith.constant 1 : index
    %c0_2 = arith.constant 0 : index
    %c0_3 = arith.constant 0 : index
    %2 = vector.load %arg2[%c1, %c0_2, %c0_3] : memref<3x8x128xf32, #tpu.memory_space<vmem>>, vector<1x8x128xf32>
    %3 = vector.shape_cast %2 : vector<1x8x128xf32> to vector<8x128xf32>
    %c2 = arith.constant 2 : index
    %c0_4 = arith.constant 0 : index
    %c0_5 = arith.constant 0 : index
    %4 = vector.load %arg2[%c2, %c0_4, %c0_5] : memref<3x8x128xf32, #tpu.memory_space<vmem>>, vector<1x8x128xf32>
    %5 = vector.shape_cast %4 : vector<1x8x128xf32> to vector<8x128xf32>
    %c0_6 = arith.constant 0 : index
    %6 = memref.load %arg1[%c0_6] : memref<12xf32, #tpu.memory_space<smem>>
    %7 = vector.broadcast %6 : f32 to vector<8x128xf32>
    %8 = arith.mulf %7, %1 : vector<8x128xf32>
    %c1_7 = arith.constant 1 : index
    %9 = memref.load %arg1[%c1_7] : memref<12xf32, #tpu.memory_space<smem>>
    %10 = vector.broadcast %9 : f32 to vector<8x128xf32>
    %11 = arith.mulf %10, %3 : vector<8x128xf32>
    %12 = arith.addf %8, %11 : vector<8x128xf32>
    %c2_8 = arith.constant 2 : index
    %13 = memref.load %arg1[%c2_8] : memref<12xf32, #tpu.memory_space<smem>>
    %14 = vector.broadcast %13 : f32 to vector<8x128xf32>
    %15 = arith.mulf %14, %5 : vector<8x128xf32>
    %16 = arith.addf %12, %15 : vector<8x128xf32>
    %c3 = arith.constant 3 : index
    %17 = memref.load %arg1[%c3] : memref<12xf32, #tpu.memory_space<smem>>
    %18 = vector.broadcast %17 : f32 to vector<8x128xf32>
    %19 = arith.addf %16, %18 : vector<8x128xf32>
    %c0_9 = arith.constant 0 : index
    %c0_10 = arith.constant 0 : index
    %c0_11 = arith.constant 0 : index
    %20 = vector.load %arg3[%c0_9, %c0_10, %c0_11] : memref<3x8x128xf32, #tpu.memory_space<vmem>>, vector<1x8x128xf32>
    %21 = vector.shape_cast %20 : vector<1x8x128xf32> to vector<8x128xf32>
    %22 = vector.shape_cast %19 : vector<8x128xf32> to vector<1x8x128xf32>
    tpu.vector_store %arg3[%c0_9, %c0_10, %c0_11], %22 {strides = array<i32>} : memref<3x8x128xf32, #tpu.memory_space<vmem>>, vector<1x8x128xf32>,
    %c4 = arith.constant 4 : index
    %23 = memref.load %arg1[%c4] : memref<12xf32, #tpu.memory_space<smem>>
    %24 = vector.broadcast %23 : f32 to vector<8x128xf32>
    %25 = arith.mulf %24, %1 : vector<8x128xf32>
    %c5 = arith.constant 5 : index
    %26 = memref.load %arg1[%c5] : memref<12xf32, #tpu.memory_space<smem>>
    %27 = vector.broadcast %26 : f32 to vector<8x128xf32>
    %28 = arith.mulf %27, %3 : vector<8x128xf32>
    %29 = arith.addf %25, %28 : vector<8x128xf32>
    %c6 = arith.constant 6 : index
    %30 = memref.load %arg1[%c6] : memref<12xf32, #tpu.memory_space<smem>>
    %31 = vector.broadcast %30 : f32 to vector<8x128xf32>
    %32 = arith.mulf %31, %5 : vector<8x128xf32>
    %33 = arith.addf %29, %32 : vector<8x128xf32>
    %c7 = arith.constant 7 : index
    %34 = memref.load %arg1[%c7] : memref<12xf32, #tpu.memory_space<smem>>
    %35 = vector.broadcast %34 : f32 to vector<8x128xf32>
    %36 = arith.addf %33, %35 : vector<8x128xf32>
    %c1_12 = arith.constant 1 : index
    %c0_13 = arith.constant 0 : index
    %c0_14 = arith.constant 0 : index
    %37 = vector.load %arg3[%c1_12, %c0_13, %c0_14] : memref<3x8x128xf32, #tpu.memory_space<vmem>>, vector<1x8x128xf32>
    %38 = vector.shape_cast %37 : vector<1x8x128xf32> to vector<8x128xf32>
    %39 = vector.shape_cast %36 : vector<8x128xf32> to vector<1x8x128xf32>
    tpu.vector_store %arg3[%c1_12, %c0_13, %c0_14], %39 {strides = array<i32>} : memref<3x8x128xf32, #tpu.memory_space<vmem>>, vector<1x8x128xf32>,
    %c8 = arith.constant 8 : index
    %40 = memref.load %arg1[%c8] : memref<12xf32, #tpu.memory_space<smem>>
    %41 = vector.broadcast %40 : f32 to vector<8x128xf32>
    %42 = arith.mulf %41, %1 : vector<8x128xf32>
    %c9 = arith.constant 9 : index
    %43 = memref.load %arg1[%c9] : memref<12xf32, #tpu.memory_space<smem>>
    %44 = vector.broadcast %43 : f32 to vector<8x128xf32>
    %45 = arith.mulf %44, %3 : vector<8x128xf32>
    %46 = arith.addf %42, %45 : vector<8x128xf32>
    %c10 = arith.constant 10 : index
    %47 = memref.load %arg1[%c10] : memref<12xf32, #tpu.memory_space<smem>>
    %48 = vector.broadcast %47 : f32 to vector<8x128xf32>
    %49 = arith.mulf %48, %5 : vector<8x128xf32>
    %50 = arith.addf %46, %49 : vector<8x128xf32>
    %c11 = arith.constant 11 : index
    %51 = memref.load %arg1[%c11] : memref<12xf32, #tpu.memory_space<smem>>
    %52 = vector.broadcast %51 : f32 to vector<8x128xf32>
    %53 = arith.addf %50, %52 : vector<8x128xf32>
    %c2_15 = arith.constant 2 : index
    %c0_16 = arith.constant 0 : index
    %c0_17 = arith.constant 0 : index
    %54 = vector.load %arg3[%c2_15, %c0_16, %c0_17] : memref<3x8x128xf32, #tpu.memory_space<vmem>>, vector<1x8x128xf32>
    %55 = vector.shape_cast %54 : vector<1x8x128xf32> to vector<8x128xf32>
    %56 = vector.shape_cast %53 : vector<8x128xf32> to vector<1x8x128xf32>
    tpu.vector_store %arg3[%c2_15, %c0_16, %c0_17], %56 {strides = array<i32>} : memref<3x8x128xf32, #tpu.memory_space<vmem>>, vector<1x8x128xf32>,
    return
  }
  func.func @transform_0(%arg0: i32, %arg1: memref<12xf32, #tpu.memory_space<smem>>) -> (i32, i32, i32) {
    %c0_i32 = arith.constant 0 : i32
    %c0_i32_0 = arith.constant 0 : i32
    %c0_i32_1 = arith.constant 0 : i32
    return %c0_i32, %arg0, %c0_i32_0 : i32, i32, i32
  }
  func.func @transform_1(%arg0: i32, %arg1: memref<12xf32, #tpu.memory_space<smem>>) -> (i32, i32, i32) {
    %c0_i32 = arith.constant 0 : i32
    %c0_i32_0 = arith.constant 0 : i32
    %c0_i32_1 = arith.constant 0 : i32
    return %c0_i32, %arg0, %c0_i32_0 : i32, i32, i32
  }
}

</mosaic_0001>

<bundles_post_ra>
// kernel: transform_forward.1
= control target key start
LH: loop header
LB: loop body
LE: loop exit
PB: predicated region body
PF: predicated region fallthrough
CT: control target
= control target key end

     0   :  { %s138_s0 = inlined_call_operand.vmem [shape: f32[12], index: 0, kind: input, shape index: {}]   ;;  %s139_s1 = inlined_call_operand.vmem [shape: f32[3,8,128], index: 1, kind: input, shape index: {}]   ;;  %s140_s2 = inlined_call_operand.vmem [shape: f32[3,8,128], index: 2, kind: output, shape index: {}]  }
   0x1   :  { %s7_s11 = sshll.u32 %s138_s0, 4  ;;  %s8_s11 = int_to_ptr.vmem [resolvable:$true] %s7_s11 }
   0x2   :  { %s87_s12 = scalar_lea.vmem %s8_s11, 16  ;;  %p92_p1 = scmp.lt.s32.totalorder %s8_s11, %s8_s11 }
   0x3   :  { %p88_p0 = scmp.ne.s32.totalorder %s8_s11, %s87_s12  ;;  %p93_p2 = scmp.lt.s32.totalorder %s87_s12, %s87_s12 }
   0x5   :  { %p94_p3 = por %p93_p2, %p92_p1 }
   0x7   :  { %p95_p4 = pnand %p94_p3, %p88_p0 }
   0x9   :  { %98 = shalt.err (!%p95_p4)  }
   0xa   :  { %s101_s13 = smov [#allocation3]  }
   0xb   :  { %10 = dma.vmem_to_smem %s8_s11, 16, %s101_s13, [#allocation2] }
   0xc   :  { %99 = dma.done.wait [#allocation2], 16 }
   0xd   :  { %100 = vsyncadd [#allocation2], 4294967280 }
   0xe   :  { %12 = sfence }
   0xf   :  { %s20_s14 = sld [smem:[#allocation3]]  ;;  %v15_v0 = vld [vmem:[%s139_s1] sm:$0xff]  ;;  %v71_v1 = vld [vmem:[%s139_s1 + $0x8] sm:$0xff]  ;;  %v72_v2 = vld [vmem:[%s139_s1 + $0x10] sm:$0xff] }
  0x10   :  { %s73_s15 = sld [smem:[#allocation3 + $0x1]] }
  0x11   :  { %s74_s16 = sld [smem:[#allocation3 + $0x2]] }
  0x12   :  { %s75_s17 = sld [smem:[#allocation3 + $0x3]] }
  0x13   :  { %s76_s0 = sld [smem:[#allocation3 + $0x4]] }
  0x14   :  { %s77_s22 = sld [smem:[#allocation3 + $0x5]] }
  0x15   :  { %v21_v3 = vstv %s20_s14  ;;  %s78_s25 = sld [smem:[#allocation3 + $0x6]] }
  0x16   :  { %v22_v4 = vmul.f32 %v21_v3, %v15_v0  ;;  %v24_v5 = vstv %s73_s15  ;;  %s79_s26 = sld [smem:[#allocation3 + $0x7]] }
  0x17   :  { %v25_v6 = vmul.f32 %v71_v1, %v24_v5  ;;  %v28_v7 = vstv %s74_s16  ;;  %s81_s27 = sld [smem:[#allocation3 + $0x8]] }
  0x18   :  { %v29_v8 = vmul.f32 %v72_v2, %v28_v7  ;;  %s82_s28 = sld [smem:[#allocation3 + $0x9]]  ;;  %v32_v11 = vstv %s75_s17 }
  0x19   :  { %v26_v9 = vadd.f32 %v25_v6, %v22_v4  ;;  %v36_v10 = vstv %s76_s0  ;;  %s83_s29 = sld [smem:[#allocation3 + $0xa]] }
  0x1a   :  { %v37_v12 = vmul.f32 %v36_v10, %v15_v0  ;;  %v39_v13 = vstv %s77_s22  ;;  %s84_s30 = sld [smem:[#allocation3 + $0xb]] }
  0x1b   :  { %v30_v14 = vadd.f32 %v29_v8, %v26_v9  ;;  %v40_v15 = vmul.f32 %v71_v1, %v39_v13  ;;  %v43_v16 = vstv %s78_s25 }
  0x1c   :  { %v44_v17 = vmul.f32 %v72_v2, %v43_v16  ;;  %v47_v21 = vstv %s79_s26 }
  0x1d   :  { %v33_v18 = vadd.f32 %v32_v11, %v30_v14  ;;  %v41_v19 = vadd.f32 %v40_v15, %v37_v12  ;;  %v52_v20 = vstv %s81_s27 }
  0x1e   :  { %v53_v22 = vmul.f32 %v52_v20, %v15_v0  ;;  %v55_v23 = vstv %s82_s28 }
  0x1f   :  { %34 = vst [vmem:[%s140_s2] sm:$0xff] %v33_v18  ;;  %v45_v24 = vadd.f32 %v44_v17, %v41_v19  ;;  %v56_v25 = vmul.f32 %v71_v1, %v55_v23  ;;  %v59_v26 = vstv %s83_s29 }
  0x20   :  { %v60_v27 = vmul.f32 %v72_v2, %v59_v26  ;;  %v63_v30 = vstv %s84_s30 }
  0x21   :  { %v48_v28 = vadd.f32 %v47_v21, %v45_v24  ;;  %v57_v29 = vadd.f32 %v56_v25, %v53_v22 }
  0x23   :  { %80 = vst [vmem:[%s140_s2 + $0x8] sm:$0xff] %v48_v28  ;;  %v61_v31 = vadd.f32 %v60_v27, %v57_v29 }
  0x25   :  { %v64_v32 = vadd.f32 %v63_v30, %v61_v31 }
  0x27   :  { %85 = vst [vmem:[%s140_s2 + $0x10] sm:$0xff] %v64_v32 }

</bundles_post_ra>
